<compile_context>
chip_gen: v7x
topology: tpu7x:2x2x1
jax: 0.10.0
libtpu: 0.0.40
codegen_flags: <defaults>
</compile_context>

<pallas_src>
import jax
import jax.numpy as jnp
from jax import lax
from jax.experimental import pallas as pl
from jax.experimental.pallas import tpu as pltpu
import numpy as np

# ---------------- model hyper-parameters (small, consistent with forward) ---
INV_SIZE = 16     # vocab_size == inventory_size
D_FEATS  = 8
D_HID    = 32
N_LAYERS = 2
BATCH    = 2
SEQ_LEN  = 8


# ------------------------------ Pallas kernel -------------------------------
def rnn_lm_kernel(ids_ref,    # (S*B, 1) int32 token ids, time-major (row = t*B + b)
                  T_ref,      # (V, 2H)  [feat @ wih0 + b0 | b1 broadcast over rows]
                  wf_ref,     # (2H, 2H) fused recurrent weights [[whh0, wih1],[0, whh1]]
                  wout_ref,   # (H, V)
                  bout_ref,   # (1, V)
                  out_ref,    # (S*B, V) logits, BATCH-FIRST rows (row = b*S + t)
                  hid_ref):   # (S*B, H) top-layer hidden, BATCH-FIRST rows
    S, B, H, V = SEQ_LEN, BATCH, D_HID, INV_SIZE
    SB = S * B
    H2 = 2 * H

    # ---- load all weights once -------------------------------------------
    T = T_ref[...]
    Wf = wf_ref[...]
    wout = wout_ref[...]
    bout = bout_ref[...]

    # ---- fused embedding + layer-0 projection + biases, ONE matmul ---------
    # bias_all[t*B + b] = [x_{b,t} @ wih0 + b0 | b1]   (exact: one-hot rows sum to 1)
    ids = ids_ref[...]                                               # (SB, 1)
    iota = lax.broadcasted_iota(jnp.int32, (SB, V), 1)               # (SB, V)
    onehot = (ids == iota).astype(jnp.float32)                       # (SB, V)
    bias_all = jnp.dot(onehot, T, preferred_element_type=jnp.float32)  # (SB, 2H)

    def emit(t, h1):
        # h1: (B, H) top-layer hidden at time t.  Store at batch-first row offsets
        # b*S + t (static, loop fully unrolled).  The small logits matmul rides the
        # otherwise-idle MXU and only feeds stores -> off the recurrent chain.
        logits = jnp.dot(h1, wout, preferred_element_type=jnp.float32) + bout
        for b in range(B):
            r = b * S + t
            hid_ref[r:r + 1, :] = h1[b:b + 1, :]
            out_ref[r:r + 1, :] = logits[b:b + 1, :]

    # ---- wavefront recurrence: s_k = [h0_{k-1}, h1_{k-2}] -------------------
    # k = 0: h0_0 = tanh(xw0_0); force the h1 half to the true h1_{-1} = 0
    # (skips the s_0 @ Wf matmul entirely since s_0 == 0).
    lane = lax.broadcasted_iota(jnp.int32, (B, H2), 1)
    s = jnp.where(lane < H, jnp.tanh(bias_all[0:B, :]), 0.0)         # (B, 2H)

    # k = 1 .. S-1: one matmul + add + tanh per step; right half is h1_{k-1}.
    for k in range(1, S):                                            # fully unrolled
        s = jnp.tanh(jnp.dot(s, Wf, preferred_element_type=jnp.float32)
                     + bias_all[k * B:(k + 1) * B, :])
        emit(k - 1, s[:, H:])

    # k = S: only the layer-1 half is live; its bias (== b1) reused from block 0.
    u = jnp.dot(s, Wf, preferred_element_type=jnp.float32)
    h1_last = jnp.tanh(u[:, H:] + bias_all[0:B, H:])
    emit(S - 1, h1_last)


# ------------------------------- wrapper -------------------------------------
@jax.jit
def feature_rnnlm_forward(batch, features, weights):
    """batch: (B, S) int32 token ids; features: (INV_SIZE, D_FEATS).
    Returns (outputs (B,S,V), output (B,S,D_HID)) like the PyTorch module."""
    (wih0, whh0, b0), (wih1, whh1, b1), (wout, bout) = weights
    B, S = batch.shape
    V = wout.shape[1]
    H = whh0.shape[0]
    SB = S * B

    # time-major flat ids (row = t*B + b); 64 bytes, fused into this single launch
    ids_tm = jnp.transpose(batch).reshape(SB, 1).astype(jnp.int32)

    # fold the embedding table into the layer-0 input projection, b1 alongside:
    #   T = [feat @ wih0 + b0 | b1]  =>  onehot @ T = [x @ wih0 + b0 | b1]
    T = jnp.concatenate(
        [features @ wih0 + b0,
         jnp.broadcast_to(b1, (features.shape[0], H))], axis=1)      # (V, 2H)

    # fused wavefront recurrent weight: [h0, h1p] @ Wf = [h0@whh0, h0@wih1 + h1p@whh1]
    Wf = jnp.concatenate(
        [jnp.concatenate([whh0, wih1], axis=1),
         jnp.concatenate([jnp.zeros((H, H), jnp.float32), whh1], axis=1)],
        axis=0)                                                      # (2H, 2H)

    vmem = pl.BlockSpec(memory_space=pltpu.MemorySpace.VMEM)
    logits_bf, hid_bf = pl.pallas_call(
        rnn_lm_kernel,
        out_shape=(jax.ShapeDtypeStruct((SB, V), jnp.float32),
                   jax.ShapeDtypeStruct((SB, H), jnp.float32)),
        in_specs=[vmem] * 5,
        out_specs=(vmem, vmem),
    )(ids_tm, T, Wf, wout, bout)

    # kernel already wrote batch-first rows -> layout-preserving reshapes only
    return logits_bf.reshape(B, S, V), hid_bf.reshape(B, S, H)


# --------------------------- pure-JAX reference -------------------------------
def reference_forward(batch, features, weights):
    (wih0, whh0, b0), (wih1, whh1, b1), (wout, bout) = weights
    x = features[batch]                              # (B, S, D_FEATS)
    B = x.shape[0]
    h_in = x
    for (wih, whh, b) in ((wih0, whh0, b0), (wih1, whh1, b1)):
        def step(h_prev, x_t):
            h_new = jnp.tanh(x_t @ wih + h_prev @ whh + b[0])
            return h_new, h_new
        h0 = jnp.zeros((B, D_HID), jnp.float32)
        _, hs = lax.scan(step, h0, jnp.transpose(h_in, (1, 0, 2)))
        h_in = jnp.transpose(hs, (1, 0, 2))
    out = h_in @ wout + bout[0]
    return out, h_in


# ------------------------------- main -----------------------------------------
if __name__ == "__main__":
    key = jax.random.PRNGKey(0)
    keys = jax.random.split(key, 12)

    # deterministic "parameters" (PyTorch-style uniform(-1/sqrt(d_hid), 1/sqrt(d_hid)))
    bound = 1.0 / np.sqrt(D_HID)
    def u(k, shape):
        return jax.random.uniform(k, shape, jnp.float32, -bound, bound)

    # layer 0: input D_FEATS -> D_HID; layer 1: D_HID -> D_HID
    # (weights stored (in, out) == PyTorch W.T; biases b_ih + b_hh pre-summed)
    wih0 = u(keys[0], (D_FEATS, D_HID))
    whh0 = u(keys[1], (D_HID, D_HID))
    b0   = (u(keys[2], (1, D_HID)) + u(keys[3], (1, D_HID)))
    wih1 = u(keys[4], (D_HID, D_HID))
    whh1 = u(keys[5], (D_HID, D_HID))
    b1   = (u(keys[6], (1, D_HID)) + u(keys[7], (1, D_HID)))
    wout = u(keys[8], (D_HID, INV_SIZE))
    bout = u(keys[9], (1, INV_SIZE))
    weights = ((wih0, whh0, b0), (wih1, whh1, b1), (wout, bout))

    # feature table and integer batch (ids assumed in [0, INV_SIZE), like nn.Embedding)
    features = jax.random.normal(keys[10], (INV_SIZE, D_FEATS), jnp.float32)
    batch = jax.random.randint(keys[11], (BATCH, SEQ_LEN), 0, INV_SIZE, jnp.int32)

    outputs, output = feature_rnnlm_forward(batch, features, weights)
    jax.block_until_ready((outputs, output))

    ref_outputs, ref_output = reference_forward(batch, features, weights)
    assert outputs.shape == (BATCH, SEQ_LEN, INV_SIZE)
    assert output.shape == (BATCH, SEQ_LEN, D_HID)
    np.testing.assert_allclose(np.asarray(outputs), np.asarray(ref_outputs),
                               rtol=1e-5, atol=1e-5)
    np.testing.assert_allclose(np.asarray(output), np.asarray(ref_output),
                               rtol=1e-5, atol=1e-5)

    print("KERNEL_OK")
</pallas_src>

<mosaic_0001>
module attributes {stable_mosaic.version = 11 : i64} {
  func.func @rnn_lm_kernel(%arg0: memref<16x1xi32, #tpu.memory_space<vmem>>, %arg1: memref<16x64xf32, #tpu.memory_space<vmem>>, %arg2: memref<64x64xf32, #tpu.memory_space<vmem>>, %arg3: memref<32x16xf32, #tpu.memory_space<vmem>>, %arg4: memref<1x16xf32, #tpu.memory_space<vmem>>, %arg5: memref<16x16xf32, #tpu.memory_space<vmem>>, %arg6: memref<16x32xf32, #tpu.memory_space<vmem>>) attributes {dimension_semantics = [], scalar_prefetch = 0 : i64, scratch_operands = 0 : i64, tpu.core_type = #tpu.core_type<tc>} {
    %c0 = arith.constant 0 : index
    %c0_0 = arith.constant 0 : index
    %0 = vector.load %arg1[%c0, %c0_0] : memref<16x64xf32, #tpu.memory_space<vmem>>, vector<16x64xf32>
    %c0_1 = arith.constant 0 : index
    %c0_2 = arith.constant 0 : index
    %1 = vector.load %arg2[%c0_1, %c0_2] : memref<64x64xf32, #tpu.memory_space<vmem>>, vector<64x64xf32>
    %c0_3 = arith.constant 0 : index
    %c0_4 = arith.constant 0 : index
    %2 = vector.load %arg3[%c0_3, %c0_4] : memref<32x16xf32, #tpu.memory_space<vmem>>, vector<32x16xf32>
    %c0_5 = arith.constant 0 : index
    %c0_6 = arith.constant 0 : index
    %3 = vector.load %arg4[%c0_5, %c0_6] : memref<1x16xf32, #tpu.memory_space<vmem>>, vector<1x16xf32>
    %c0_7 = arith.constant 0 : index
    %c0_8 = arith.constant 0 : index
    %4 = vector.load %arg0[%c0_7, %c0_8] : memref<16x1xi32, #tpu.memory_space<vmem>>, vector<16x1xi32>
    %5 = tpu.iota {dimensions = array<i32: 1>} : vector<16x16xi32>
    %6 = vector.broadcast %4 : vector<16x1xi32> to vector<16x16xi32>
    %7 = arith.cmpi eq, %6, %5 : vector<16x16xi32>
    %8 = arith.extui %7 : vector<16x16xi1> to vector<16x16xi32>
    %9 = arith.sitofp %8 : vector<16x16xi32> to vector<16x16xf32>
    %cst = arith.constant dense<0.000000e+00> : vector<16x64xf32>
    %10 = tpu.matmul %9, %0, %cst {dimension_numbers = #tpu.dot_dimension_numbers<[1], [0], [0], [1], [0, 0, 1, 1], [], []>} : vector<16x16xf32>, vector<16x64xf32>, vector<16x64xf32> -> vector<16x64xf32>
    %11 = tpu.iota {dimensions = array<i32: 1>} : vector<2x64xi32>
    %c32_i32 = arith.constant 32 : i32
    %12 = vector.broadcast %c32_i32 : i32 to vector<2x64xi32>
    %13 = arith.cmpi slt, %11, %12 : vector<2x64xi32>
    %14 = vector.extract_strided_slice %10 {offsets = [0, 0], sizes = [2, 64], strides = [1, 1]} : vector<16x64xf32> to vector<2x64xf32>
    %15 = math.tanh %14 : vector<2x64xf32>
    %cst_9 = arith.constant 0.000000e+00 : f32
    %16 = vector.broadcast %cst_9 : f32 to vector<2x64xf32>
    %17 = arith.select %13, %15, %16 : vector<2x64xi1>, vector<2x64xf32>
    %cst_10 = arith.constant dense<0.000000e+00> : vector<2x64xf32>
    %18 = tpu.matmul %17, %1, %cst_10 {dimension_numbers = #tpu.dot_dimension_numbers<[1], [0], [0], [1], [0, 0, 1, 1], [], []>} : vector<2x64xf32>, vector<64x64xf32>, vector<2x64xf32> -> vector<2x64xf32>
    %19 = vector.extract_strided_slice %10 {offsets = [2, 0], sizes = [2, 64], strides = [1, 1]} : vector<16x64xf32> to vector<2x64xf32>
    %20 = arith.addf %18, %19 : vector<2x64xf32>
    %21 = math.tanh %20 : vector<2x64xf32>
    %22 = vector.extract_strided_slice %21 {offsets = [0, 32], sizes = [2, 32], strides = [1, 1]} : vector<2x64xf32> to vector<2x32xf32>
    %cst_11 = arith.constant dense<0.000000e+00> : vector<2x16xf32>
    %23 = tpu.matmul %22, %2, %cst_11 {dimension_numbers = #tpu.dot_dimension_numbers<[1], [0], [0], [1], [0, 0, 1, 1], [], []>} : vector<2x32xf32>, vector<32x16xf32>, vector<2x16xf32> -> vector<2x16xf32>
    %24 = vector.broadcast %3 : vector<1x16xf32> to vector<2x16xf32>
    %25 = arith.addf %23, %24 : vector<2x16xf32>
    %26 = vector.extract_strided_slice %22 {offsets = [0, 0], sizes = [1, 32], strides = [1, 1]} : vector<2x32xf32> to vector<1x32xf32>
    %c0_12 = arith.constant 0 : index
    %c0_13 = arith.constant 0 : index
    %27 = vector.load %arg6[%c0_12, %c0_13] : memref<16x32xf32, #tpu.memory_space<vmem>>, vector<1x32xf32>
    tpu.vector_store %arg6[%c0_12, %c0_13], %26 {strides = array<i32>} : memref<16x32xf32, #tpu.memory_space<vmem>>, vector<1x32xf32>,
    %28 = vector.extract_strided_slice %25 {offsets = [0, 0], sizes = [1, 16], strides = [1, 1]} : vector<2x16xf32> to vector<1x16xf32>
    %c0_14 = arith.constant 0 : index
    %c0_15 = arith.constant 0 : index
    %29 = vector.load %arg5[%c0_14, %c0_15] : memref<16x16xf32, #tpu.memory_space<vmem>>, vector<1x16xf32>
    tpu.vector_store %arg5[%c0_14, %c0_15], %28 {strides = array<i32>} : memref<16x16xf32, #tpu.memory_space<vmem>>, vector<1x16xf32>,
    %30 = vector.extract_strided_slice %22 {offsets = [1, 0], sizes = [1, 32], strides = [1, 1]} : vector<2x32xf32> to vector<1x32xf32>
    %c8 = arith.constant 8 : index
    %c0_16 = arith.constant 0 : index
    %31 = vector.load %arg6[%c8, %c0_16] : memref<16x32xf32, #tpu.memory_space<vmem>>, vector<1x32xf32>
    tpu.vector_store %arg6[%c8, %c0_16], %30 {strides = array<i32>} : memref<16x32xf32, #tpu.memory_space<vmem>>, vector<1x32xf32>,
    %32 = vector.extract_strided_slice %25 {offsets = [1, 0], sizes = [1, 16], strides = [1, 1]} : vector<2x16xf32> to vector<1x16xf32>
    %c8_17 = arith.constant 8 : index
    %c0_18 = arith.constant 0 : index
    %33 = vector.load %arg5[%c8_17, %c0_18] : memref<16x16xf32, #tpu.memory_space<vmem>>, vector<1x16xf32>
    tpu.vector_store %arg5[%c8_17, %c0_18], %32 {strides = array<i32>} : memref<16x16xf32, #tpu.memory_space<vmem>>, vector<1x16xf32>,
    %cst_19 = arith.constant dense<0.000000e+00> : vector<2x64xf32>
    %34 = tpu.matmul %21, %1, %cst_19 {dimension_numbers = #tpu.dot_dimension_numbers<[1], [0], [0], [1], [0, 0, 1, 1], [], []>} : vector<2x64xf32>, vector<64x64xf32>, vector<2x64xf32> -> vector<2x64xf32>
    %35 = vector.extract_strided_slice %10 {offsets = [4, 0], sizes = [2, 64], strides = [1, 1]} : vector<16x64xf32> to vector<2x64xf32>
    %36 = arith.addf %34, %35 : vector<2x64xf32>
    %37 = math.tanh %36 : vector<2x64xf32>
    %38 = vector.extract_strided_slice %37 {offsets = [0, 32], sizes = [2, 32], strides = [1, 1]} : vector<2x64xf32> to vector<2x32xf32>
    %cst_20 = arith.constant dense<0.000000e+00> : vector<2x16xf32>
    %39 = tpu.matmul %38, %2, %cst_20 {dimension_numbers = #tpu.dot_dimension_numbers<[1], [0], [0], [1], [0, 0, 1, 1], [], []>} : vector<2x32xf32>, vector<32x16xf32>, vector<2x16xf32> -> vector<2x16xf32>
    %40 = vector.broadcast %3 : vector<1x16xf32> to vector<2x16xf32>
    %41 = arith.addf %39, %40 : vector<2x16xf32>
    %42 = vector.extract_strided_slice %38 {offsets = [0, 0], sizes = [1, 32], strides = [1, 1]} : vector<2x32xf32> to vector<1x32xf32>
    %c1 = arith.constant 1 : index
    %c0_21 = arith.constant 0 : index
    %43 = vector.load %arg6[%c1, %c0_21] : memref<16x32xf32, #tpu.memory_space<vmem>>, vector<1x32xf32>
    tpu.vector_store %arg6[%c1, %c0_21], %42 {strides = array<i32>} : memref<16x32xf32, #tpu.memory_space<vmem>>, vector<1x32xf32>,
    %44 = vector.extract_strided_slice %41 {offsets = [0, 0], sizes = [1, 16], strides = [1, 1]} : vector<2x16xf32> to vector<1x16xf32>
    %c1_22 = arith.constant 1 : index
    %c0_23 = arith.constant 0 : index
    %45 = vector.load %arg5[%c1_22, %c0_23] : memref<16x16xf32, #tpu.memory_space<vmem>>, vector<1x16xf32>
    tpu.vector_store %arg5[%c1_22, %c0_23], %44 {strides = array<i32>} : memref<16x16xf32, #tpu.memory_space<vmem>>, vector<1x16xf32>,
    %46 = vector.extract_strided_slice %38 {offsets = [1, 0], sizes = [1, 32], strides = [1, 1]} : vector<2x32xf32> to vector<1x32xf32>
    %c9 = arith.constant 9 : index
    %c0_24 = arith.constant 0 : index
    %47 = vector.load %arg6[%c9, %c0_24] : memref<16x32xf32, #tpu.memory_space<vmem>>, vector<1x32xf32>
    tpu.vector_store %arg6[%c9, %c0_24], %46 {strides = array<i32>} : memref<16x32xf32, #tpu.memory_space<vmem>>, vector<1x32xf32>,
    %48 = vector.extract_strided_slice %41 {offsets = [1, 0], sizes = [1, 16], strides = [1, 1]} : vector<2x16xf32> to vector<1x16xf32>
    %c9_25 = arith.constant 9 : index
    %c0_26 = arith.constant 0 : index
    %49 = vector.load %arg5[%c9_25, %c0_26] : memref<16x16xf32, #tpu.memory_space<vmem>>, vector<1x16xf32>
    tpu.vector_store %arg5[%c9_25, %c0_26], %48 {strides = array<i32>} : memref<16x16xf32, #tpu.memory_space<vmem>>, vector<1x16xf32>,
    %cst_27 = arith.constant dense<0.000000e+00> : vector<2x64xf32>
    %50 = tpu.matmul %37, %1, %cst_27 {dimension_numbers = #tpu.dot_dimension_numbers<[1], [0], [0], [1], [0, 0, 1, 1], [], []>} : vector<2x64xf32>, vector<64x64xf32>, vector<2x64xf32> -> vector<2x64xf32>
    %51 = vector.extract_strided_slice %10 {offsets = [6, 0], sizes = [2, 64], strides = [1, 1]} : vector<16x64xf32> to vector<2x64xf32>
    %52 = arith.addf %50, %51 : vector<2x64xf32>
    %53 = math.tanh %52 : vector<2x64xf32>
    %54 = vector.extract_strided_slice %53 {offsets = [0, 32], sizes = [2, 32], strides = [1, 1]} : vector<2x64xf32> to vector<2x32xf32>
    %cst_28 = arith.constant dense<0.000000e+00> : vector<2x16xf32>
    %55 = tpu.matmul %54, %2, %cst_28 {dimension_numbers = #tpu.dot_dimension_numbers<[1], [0], [0], [1], [0, 0, 1, 1], [], []>} : vector<2x32xf32>, vector<32x16xf32>, vector<2x16xf32> -> vector<2x16xf32>
    %56 = vector.broadcast %3 : vector<1x16xf32> to vector<2x16xf32>
    %57 = arith.addf %55, %56 : vector<2x16xf32>
    %58 = vector.extract_strided_slice %54 {offsets = [0, 0], sizes = [1, 32], strides = [1, 1]} : vector<2x32xf32> to vector<1x32xf32>
    %c2 = arith.constant 2 : index
    %c0_29 = arith.constant 0 : index
    %59 = vector.load %arg6[%c2, %c0_29] : memref<16x32xf32, #tpu.memory_space<vmem>>, vector<1x32xf32>
    tpu.vector_store %arg6[%c2, %c0_29], %58 {strides = array<i32>} : memref<16x32xf32, #tpu.memory_space<vmem>>, vector<1x32xf32>,
    %60 = vector.extract_strided_slice %57 {offsets = [0, 0], sizes = [1, 16], strides = [1, 1]} : vector<2x16xf32> to vector<1x16xf32>
    %c2_30 = arith.constant 2 : index
    %c0_31 = arith.constant 0 : index
    %61 = vector.load %arg5[%c2_30, %c0_31] : memref<16x16xf32, #tpu.memory_space<vmem>>, vector<1x16xf32>
    tpu.vector_store %arg5[%c2_30, %c0_31], %60 {strides = array<i32>} : memref<16x16xf32, #tpu.memory_space<vmem>>, vector<1x16xf32>,
    %62 = vector.extract_strided_slice %54 {offsets = [1, 0], sizes = [1, 32], strides = [1, 1]} : vector<2x32xf32> to vector<1x32xf32>
    %c10 = arith.constant 10 : index
    %c0_32 = arith.constant 0 : index
    %63 = vector.load %arg6[%c10, %c0_32] : memref<16x32xf32, #tpu.memory_space<vmem>>, vector<1x32xf32>
    tpu.vector_store %arg6[%c10, %c0_32], %62 {strides = array<i32>} : memref<16x32xf32, #tpu.memory_space<vmem>>, vector<1x32xf32>,
    %64 = vector.extract_strided_slice %57 {offsets = [1, 0], sizes = [1, 16], strides = [1, 1]} : vector<2x16xf32> to vector<1x16xf32>
    %c10_33 = arith.constant 10 : index
    %c0_34 = arith.constant 0 : index
    %65 = vector.load %arg5[%c10_33, %c0_34] : memref<16x16xf32, #tpu.memory_space<vmem>>, vector<1x16xf32>
    tpu.vector_store %arg5[%c10_33, %c0_34], %64 {strides = array<i32>} : memref<16x16xf32, #tpu.memory_space<vmem>>, vector<1x16xf32>,
    %cst_35 = arith.constant dense<0.000000e+00> : vector<2x64xf32>
    %66 = tpu.matmul %53, %1, %cst_35 {dimension_numbers = #tpu.dot_dimension_numbers<[1], [0], [0], [1], [0, 0, 1, 1], [], []>} : vector<2x64xf32>, vector<64x64xf32>, vector<2x64xf32> -> vector<2x64xf32>
    %67 = vector.extract_strided_slice %10 {offsets = [8, 0], sizes = [2, 64], strides = [1, 1]} : vector<16x64xf32> to vector<2x64xf32>
    %68 = arith.addf %66, %67 : vector<2x64xf32>
    %69 = math.tanh %68 : vector<2x64xf32>
    %70 = vector.extract_strided_slice %69 {offsets = [0, 32], sizes = [2, 32], strides = [1, 1]} : vector<2x64xf32> to vector<2x32xf32>
    %cst_36 = arith.constant dense<0.000000e+00> : vector<2x16xf32>
    %71 = tpu.matmul %70, %2, %cst_36 {dimension_numbers = #tpu.dot_dimension_numbers<[1], [0], [0], [1], [0, 0, 1, 1], [], []>} : vector<2x32xf32>, vector<32x16xf32>, vector<2x16xf32> -> vector<2x16xf32>
    %72 = vector.broadcast %3 : vector<1x16xf32> to vector<2x16xf32>
    %73 = arith.addf %71, %72 : vector<2x16xf32>
    %74 = vector.extract_strided_slice %70 {offsets = [0, 0], sizes = [1, 32], strides = [1, 1]} : vector<2x32xf32> to vector<1x32xf32>
    %c3 = arith.constant 3 : index
    %c0_37 = arith.constant 0 : index
    %75 = vector.load %arg6[%c3, %c0_37] : memref<16x32xf32, #tpu.memory_space<vmem>>, vector<1x32xf32>
    tpu.vector_store %arg6[%c3, %c0_37], %74 {strides = array<i32>} : memref<16x32xf32, #tpu.memory_space<vmem>>, vector<1x32xf32>,
    %76 = vector.extract_strided_slice %73 {offsets = [0, 0], sizes = [1, 16], strides = [1, 1]} : vector<2x16xf32> to vector<1x16xf32>
    %c3_38 = arith.constant 3 : index
    %c0_39 = arith.constant 0 : index
    %77 = vector.load %arg5[%c3_38, %c0_39] : memref<16x16xf32, #tpu.memory_space<vmem>>, vector<1x16xf32>
    tpu.vector_store %arg5[%c3_38, %c0_39], %76 {strides = array<i32>} : memref<16x16xf32, #tpu.memory_space<vmem>>, vector<1x16xf32>,
    %78 = vector.extract_strided_slice %70 {offsets = [1, 0], sizes = [1, 32], strides = [1, 1]} : vector<2x32xf32> to vector<1x32xf32>
    %c11 = arith.constant 11 : index
    %c0_40 = arith.constant 0 : index
    %79 = vector.load %arg6[%c11, %c0_40] : memref<16x32xf32, #tpu.memory_space<vmem>>, vector<1x32xf32>
    tpu.vector_store %arg6[%c11, %c0_40], %78 {strides = array<i32>} : memref<16x32xf32, #tpu.memory_space<vmem>>, vector<1x32xf32>,
    %80 = vector.extract_strided_slice %73 {offsets = [1, 0], sizes = [1, 16], strides = [1, 1]} : vector<2x16xf32> to vector<1x16xf32>
    %c11_41 = arith.constant 11 : index
    %c0_42 = arith.constant 0 : index
    %81 = vector.load %arg5[%c11_41, %c0_42] : memref<16x16xf32, #tpu.memory_space<vmem>>, vector<1x16xf32>
    tpu.vector_store %arg5[%c11_41, %c0_42], %80 {strides = array<i32>} : memref<16x16xf32, #tpu.memory_space<vmem>>, vector<1x16xf32>,
    %cst_43 = arith.constant dense<0.000000e+00> : vector<2x64xf32>
    %82 = tpu.matmul %69, %1, %cst_43 {dimension_numbers = #tpu.dot_dimension_numbers<[1], [0], [0], [1], [0, 0, 1, 1], [], []>} : vector<2x64xf32>, vector<64x64xf32>, vector<2x64xf32> -> vector<2x64xf32>
    %83 = vector.extract_strided_slice %10 {offsets = [10, 0], sizes = [2, 64], strides = [1, 1]} : vector<16x64xf32> to vector<2x64xf32>
    %84 = arith.addf %82, %83 : vector<2x64xf32>
    %85 = math.tanh %84 : vector<2x64xf32>
    %86 = vector.extract_strided_slice %85 {offsets = [0, 32], sizes = [2, 32], strides = [1, 1]} : vector<2x64xf32> to vector<2x32xf32>
    %cst_44 = arith.constant dense<0.000000e+00> : vector<2x16xf32>
    %87 = tpu.matmul %86, %2, %cst_44 {dimension_numbers = #tpu.dot_dimension_numbers<[1], [0], [0], [1], [0, 0, 1, 1], [], []>} : vector<2x32xf32>, vector<32x16xf32>, vector<2x16xf32> -> vector<2x16xf32>
    %88 = vector.broadcast %3 : vector<1x16xf32> to vector<2x16xf32>
    %89 = arith.addf %87, %88 : vector<2x16xf32>
    %90 = vector.extract_strided_slice %86 {offsets = [0, 0], sizes = [1, 32], strides = [1, 1]} : vector<2x32xf32> to vector<1x32xf32>
    %c4 = arith.constant 4 : index
    %c0_45 = arith.constant 0 : index
    %91 = vector.load %arg6[%c4, %c0_45] : memref<16x32xf32, #tpu.memory_space<vmem>>, vector<1x32xf32>
    tpu.vector_store %arg6[%c4, %c0_45], %90 {strides = array<i32>} : memref<16x32xf32, #tpu.memory_space<vmem>>, vector<1x32xf32>,
    %92 = vector.extract_strided_slice %89 {offsets = [0, 0], sizes = [1, 16], strides = [1, 1]} : vector<2x16xf32> to vector<1x16xf32>
    %c4_46 = arith.constant 4 : index
    %c0_47 = arith.constant 0 : index
    %93 = vector.load %arg5[%c4_46, %c0_47] : memref<16x16xf32, #tpu.memory_space<vmem>>, vector<1x16xf32>
    tpu.vector_store %arg5[%c4_46, %c0_47], %92 {strides = array<i32>} : memref<16x16xf32, #tpu.memory_space<vmem>>, vector<1x16xf32>,
    %94 = vector.extract_strided_slice %86 {offsets = [1, 0], sizes = [1, 32], strides = [1, 1]} : vector<2x32xf32> to vector<1x32xf32>
    %c12 = arith.constant 12 : index
    %c0_48 = arith.constant 0 : index
    %95 = vector.load %arg6[%c12, %c0_48] : memref<16x32xf32, #tpu.memory_space<vmem>>, vector<1x32xf32>
    tpu.vector_store %arg6[%c12, %c0_48], %94 {strides = array<i32>} : memref<16x32xf32, #tpu.memory_space<vmem>>, vector<1x32xf32>,
    %96 = vector.extract_strided_slice %89 {offsets = [1, 0], sizes = [1, 16], strides = [1, 1]} : vector<2x16xf32> to vector<1x16xf32>
    %c12_49 = arith.constant 12 : index
    %c0_50 = arith.constant 0 : index
    %97 = vector.load %arg5[%c12_49, %c0_50] : memref<16x16xf32, #tpu.memory_space<vmem>>, vector<1x16xf32>
    tpu.vector_store %arg5[%c12_49, %c0_50], %96 {strides = array<i32>} : memref<16x16xf32, #tpu.memory_space<vmem>>, vector<1x16xf32>,
    %cst_51 = arith.constant dense<0.000000e+00> : vector<2x64xf32>
    %98 = tpu.matmul %85, %1, %cst_51 {dimension_numbers = #tpu.dot_dimension_numbers<[1], [0], [0], [1], [0, 0, 1, 1], [], []>} : vector<2x64xf32>, vector<64x64xf32>, vector<2x64xf32> -> vector<2x64xf32>
    %99 = vector.extract_strided_slice %10 {offsets = [12, 0], sizes = [2, 64], strides = [1, 1]} : vector<16x64xf32> to vector<2x64xf32>
    %100 = arith.addf %98, %99 : vector<2x64xf32>
    %101 = math.tanh %100 : vector<2x64xf32>
    %102 = vector.extract_strided_slice %101 {offsets = [0, 32], sizes = [2, 32], strides = [1, 1]} : vector<2x64xf32> to vector<2x32xf32>
    %cst_52 = arith.constant dense<0.000000e+00> : vector<2x16xf32>
    %103 = tpu.matmul %102, %2, %cst_52 {dimension_numbers = #tpu.dot_dimension_numbers<[1], [0], [0], [1], [0, 0, 1, 1], [], []>} : vector<2x32xf32>, vector<32x16xf32>, vector<2x16xf32> -> vector<2x16xf32>
    %104 = vector.broadcast %3 : vector<1x16xf32> to vector<2x16xf32>
    %105 = arith.addf %103, %104 : vector<2x16xf32>
    %106 = vector.extract_strided_slice %102 {offsets = [0, 0], sizes = [1, 32], strides = [1, 1]} : vector<2x32xf32> to vector<1x32xf32>
    %c5 = arith.constant 5 : index
    %c0_53 = arith.constant 0 : index
    %107 = vector.load %arg6[%c5, %c0_53] : memref<16x32xf32, #tpu.memory_space<vmem>>, vector<1x32xf32>
    tpu.vector_store %arg6[%c5, %c0_53], %106 {strides = array<i32>} : memref<16x32xf32, #tpu.memory_space<vmem>>, vector<1x32xf32>,
    %108 = vector.extract_strided_slice %105 {offsets = [0, 0], sizes = [1, 16], strides = [1, 1]} : vector<2x16xf32> to vector<1x16xf32>
    %c5_54 = arith.constant 5 : index
    %c0_55 = arith.constant 0 : index
    %109 = vector.load %arg5[%c5_54, %c0_55] : memref<16x16xf32, #tpu.memory_space<vmem>>, vector<1x16xf32>
    tpu.vector_store %arg5[%c5_54, %c0_55], %108 {strides = array<i32>} : memref<16x16xf32, #tpu.memory_space<vmem>>, vector<1x16xf32>,
    %110 = vector.extract_strided_slice %102 {offsets = [1, 0], sizes = [1, 32], strides = [1, 1]} : vector<2x32xf32> to vector<1x32xf32>
    %c13 = arith.constant 13 : index
    %c0_56 = arith.constant 0 : index
    %111 = vector.load %arg6[%c13, %c0_56] : memref<16x32xf32, #tpu.memory_space<vmem>>, vector<1x32xf32>
    tpu.vector_store %arg6[%c13, %c0_56], %110 {strides = array<i32>} : memref<16x32xf32, #tpu.memory_space<vmem>>, vector<1x32xf32>,
    %112 = vector.extract_strided_slice %105 {offsets = [1, 0], sizes = [1, 16], strides = [1, 1]} : vector<2x16xf32> to vector<1x16xf32>
    %c13_57 = arith.constant 13 : index
    %c0_58 = arith.constant 0 : index
    %113 = vector.load %arg5[%c13_57, %c0_58] : memref<16x16xf32, #tpu.memory_space<vmem>>, vector<1x16xf32>
    tpu.vector_store %arg5[%c13_57, %c0_58], %112 {strides = array<i32>} : memref<16x16xf32, #tpu.memory_space<vmem>>, vector<1x16xf32>,
    %cst_59 = arith.constant dense<0.000000e+00> : vector<2x64xf32>
    %114 = tpu.matmul %101, %1, %cst_59 {dimension_numbers = #tpu.dot_dimension_numbers<[1], [0], [0], [1], [0, 0, 1, 1], [], []>} : vector<2x64xf32>, vector<64x64xf32>, vector<2x64xf32> -> vector<2x64xf32>
    %115 = vector.extract_strided_slice %10 {offsets = [14, 0], sizes = [2, 64], strides = [1, 1]} : vector<16x64xf32> to vector<2x64xf32>
    %116 = arith.addf %114, %115 : vector<2x64xf32>
    %117 = math.tanh %116 : vector<2x64xf32>
    %118 = vector.extract_strided_slice %117 {offsets = [0, 32], sizes = [2, 32], strides = [1, 1]} : vector<2x64xf32> to vector<2x32xf32>
    %cst_60 = arith.constant dense<0.000000e+00> : vector<2x16xf32>
    %119 = tpu.matmul %118, %2, %cst_60 {dimension_numbers = #tpu.dot_dimension_numbers<[1], [0], [0], [1], [0, 0, 1, 1], [], []>} : vector<2x32xf32>, vector<32x16xf32>, vector<2x16xf32> -> vector<2x16xf32>
    %120 = vector.broadcast %3 : vector<1x16xf32> to vector<2x16xf32>
    %121 = arith.addf %119, %120 : vector<2x16xf32>
    %122 = vector.extract_strided_slice %118 {offsets = [0, 0], sizes = [1, 32], strides = [1, 1]} : vector<2x32xf32> to vector<1x32xf32>
    %c6 = arith.constant 6 : index
    %c0_61 = arith.constant 0 : index
    %123 = vector.load %arg6[%c6, %c0_61] : memref<16x32xf32, #tpu.memory_space<vmem>>, vector<1x32xf32>
    tpu.vector_store %arg6[%c6, %c0_61], %122 {strides = array<i32>} : memref<16x32xf32, #tpu.memory_space<vmem>>, vector<1x32xf32>,
    %124 = vector.extract_strided_slice %121 {offsets = [0, 0], sizes = [1, 16], strides = [1, 1]} : vector<2x16xf32> to vector<1x16xf32>
    %c6_62 = arith.constant 6 : index
    %c0_63 = arith.constant 0 : index
    %125 = vector.load %arg5[%c6_62, %c0_63] : memref<16x16xf32, #tpu.memory_space<vmem>>, vector<1x16xf32>
    tpu.vector_store %arg5[%c6_62, %c0_63], %124 {strides = array<i32>} : memref<16x16xf32, #tpu.memory_space<vmem>>, vector<1x16xf32>,
    %126 = vector.extract_strided_slice %118 {offsets = [1, 0], sizes = [1, 32], strides = [1, 1]} : vector<2x32xf32> to vector<1x32xf32>
    %c14 = arith.constant 14 : index
    %c0_64 = arith.constant 0 : index
    %127 = vector.load %arg6[%c14, %c0_64] : memref<16x32xf32, #tpu.memory_space<vmem>>, vector<1x32xf32>
    tpu.vector_store %arg6[%c14, %c0_64], %126 {strides = array<i32>} : memref<16x32xf32, #tpu.memory_space<vmem>>, vector<1x32xf32>,
    %128 = vector.extract_strided_slice %121 {offsets = [1, 0], sizes = [1, 16], strides = [1, 1]} : vector<2x16xf32> to vector<1x16xf32>
    %c14_65 = arith.constant 14 : index
    %c0_66 = arith.constant 0 : index
    %129 = vector.load %arg5[%c14_65, %c0_66] : memref<16x16xf32, #tpu.memory_space<vmem>>, vector<1x16xf32>
    tpu.vector_store %arg5[%c14_65, %c0_66], %128 {strides = array<i32>} : memref<16x16xf32, #tpu.memory_space<vmem>>, vector<1x16xf32>,
    %cst_67 = arith.constant dense<0.000000e+00> : vector<2x64xf32>
    %130 = tpu.matmul %117, %1, %cst_67 {dimension_numbers = #tpu.dot_dimension_numbers<[1], [0], [0], [1], [0, 0, 1, 1], [], []>} : vector<2x64xf32>, vector<64x64xf32>, vector<2x64xf32> -> vector<2x64xf32>
    %131 = vector.extract_strided_slice %130 {offsets = [0, 32], sizes = [2, 32], strides = [1, 1]} : vector<2x64xf32> to vector<2x32xf32>
    %132 = vector.extract_strided_slice %10 {offsets = [0, 32], sizes = [2, 32], strides = [1, 1]} : vector<16x64xf32> to vector<2x32xf32>
    %133 = arith.addf %131, %132 : vector<2x32xf32>
    %134 = math.tanh %133 : vector<2x32xf32>
    %cst_68 = arith.constant dense<0.000000e+00> : vector<2x16xf32>
    %135 = tpu.matmul %134, %2, %cst_68 {dimension_numbers = #tpu.dot_dimension_numbers<[1], [0], [0], [1], [0, 0, 1, 1], [], []>} : vector<2x32xf32>, vector<32x16xf32>, vector<2x16xf32> -> vector<2x16xf32>
    %136 = vector.broadcast %3 : vector<1x16xf32> to vector<2x16xf32>
    %137 = arith.addf %135, %136 : vector<2x16xf32>
    %138 = vector.extract_strided_slice %134 {offsets = [0, 0], sizes = [1, 32], strides = [1, 1]} : vector<2x32xf32> to vector<1x32xf32>
    %c7 = arith.constant 7 : index
    %c0_69 = arith.constant 0 : index
    %139 = vector.load %arg6[%c7, %c0_69] : memref<16x32xf32, #tpu.memory_space<vmem>>, vector<1x32xf32>
    tpu.vector_store %arg6[%c7, %c0_69], %138 {strides = array<i32>} : memref<16x32xf32, #tpu.memory_space<vmem>>, vector<1x32xf32>,
    %140 = vector.extract_strided_slice %137 {offsets = [0, 0], sizes = [1, 16], strides = [1, 1]} : vector<2x16xf32> to vector<1x16xf32>
    %c7_70 = arith.constant 7 : index
    %c0_71 = arith.constant 0 : index
    %141 = vector.load %arg5[%c7_70, %c0_71] : memref<16x16xf32, #tpu.memory_space<vmem>>, vector<1x16xf32>
    tpu.vector_store %arg5[%c7_70, %c0_71], %140 {strides = array<i32>} : memref<16x16xf32, #tpu.memory_space<vmem>>, vector<1x16xf32>,
    %142 = vector.extract_strided_slice %134 {offsets = [1, 0], sizes = [1, 32], strides = [1, 1]} : vector<2x32xf32> to vector<1x32xf32>
    %c15 = arith.constant 15 : index
    %c0_72 = arith.constant 0 : index
    %143 = vector.load %arg6[%c15, %c0_72] : memref<16x32xf32, #tpu.memory_space<vmem>>, vector<1x32xf32>
    tpu.vector_store %arg6[%c15, %c0_72], %142 {strides = array<i32>} : memref<16x32xf32, #tpu.memory_space<vmem>>, vector<1x32xf32>,
    %144 = vector.extract_strided_slice %137 {offsets = [1, 0], sizes = [1, 16], strides = [1, 1]} : vector<2x16xf32> to vector<1x16xf32>
    %c15_73 = arith.constant 15 : index
    %c0_74 = arith.constant 0 : index
    %145 = vector.load %arg5[%c15_73, %c0_74] : memref<16x16xf32, #tpu.memory_space<vmem>>, vector<1x16xf32>
    tpu.vector_store %arg5[%c15_73, %c0_74], %144 {strides = array<i32>} : memref<16x16xf32, #tpu.memory_space<vmem>>, vector<1x16xf32>,
    return
  }
}

</mosaic_0001>

<bundles_post_ra>
// kernel: feature_rnnlm_forward.1
= control target key start
LH: loop header
LB: loop body
LE: loop exit
PB: predicated region body
PF: predicated region fallthrough
CT: control target
= control target key end

     0   :  { %12 = vsyncpa [#allocation3], 0  ;;  %s2372_s0 = inlined_call_operand.vmem [shape: s32[16,1], index: 0, kind: input, shape index: {}]   ;;  %s2373_s1 = inlined_call_operand.vmem [shape: f32[16,64], index: 1, kind: input, shape index: {}]   ;;  %s2374_s2 = inlined_call_operand.vmem [shape: f32[64,64], index: 2, kind: input, shape index: {}]   ;;  %s2375_s3 = inlined_call_operand.vmem [shape: f32[32,16], index: 3, kind: input, shape index: {}]   ;;  %s2376_s4 = inlined_call_operand.vmem [shape: f32[1,16], index: 4, kind: input, shape index: {}]   ;;  %s2377_s5 = inlined_call_operand.hbm [shape: f32[16,16], index: 5, kind: output, shape index: {0}]   ;;  %s2378_s6 = inlined_call_operand.hbm [shape: f32[16,32], index: 6, kind: output, shape index: {1}]  }
   0x1   :  { %v39_v0 = vld [vmem:[%s2372_s0] sm:$0xff] }
   0x2   :  { %13 = vsyncpa [#allocation5], 0  ;;  %v2032_v1 = vmov 0   ;;  %v24_v2 = vld [vmem:[%s2373_s1] sm:$0xff]  ;;  %v25_v3 = vld [vmem:[%s2373_s1 + $0x8] sm:$0xff]  ;;  %v2033_v8 = vmov 0.0|0.0   ;;  %v41_v10 = vlaneseq }
   0x3   :  { %1965 = vset.pattern.permute.xlu0 %v2032_v1  ;;  %v1808_v4 = vpack.c.bf16 %v25_v3, %v24_v2  ;;  %v40_v5 = vld [vmem:[%s2372_s0 + $0x8] sm:$0xff]  ;;  %v26_v6 = vld [vmem:[%s2374_s2] sm:$0xff]  ;;  %1812 = vmatprep.subr.bf16.mxu1 %v2033_v8  ;;  %vm55_vm0 = vcmask 130048   ;;  %v2034_v13 = vmov 0.0   ;;  %v28_v17 = vld [vmem:[%s2374_s2 + $0x10] sm:$0xff]  ;;  %vm2035_vm3 = vmmov 0  }
   0x4   :  { %44 = vperm.xlu0 %1965, %v39_v0   ;;  %v27_v7 = vld [vmem:[%s2374_s2 + $0x8] sm:$0xff]  ;;  %v42_v11 = vand.u32 127, %v41_v10  ;;  %v29_v18 = vld [vmem:[%s2374_s2 + $0x18] sm:$0xff]  ;;  %v30_v20 = vld [vmem:[%s2374_s2 + $0x20] sm:$0xff]  ;;  %1584 = vmatprep.mubr.msk.f32.mxu1 %vm2035_vm3, %v2034_v13  ;;  %vm143_vm5 = vcmask 523264   ;;  %vm301_vm6 = vcmask 253952  }
   0x5   :  { %1809 = vmatprep.subr.bf16.mxu0 %v1808_v4  ;;  %v2095_v9 = vpack.c.bf16 %v27_v7, %v26_v6  ;;  %v2108_v19 = vpack.c.bf16 %v29_v18, %v28_v17  ;;  %v31_v21 = vld [vmem:[%s2374_s2 + $0x28] sm:$0xff]  ;;  %v32_v23 = vld [vmem:[%s2374_s2 + $0x30] sm:$0xff]  ;;  %v33_v24 = vld [vmem:[%s2374_s2 + $0x38] sm:$0xff]  ;;  %vm305_vm7 = vcmask 254977   ;;  %vm227_vm8 = vcmask 261120  }
   0x6   :  { %1811 = vmatpush3.bf16.msra.mxu0 %v1808_v4  ;;  %v2117_v22 = vpack.c.bf16 %v31_v21, %v30_v20  ;;  %v2131_v25 = vpack.c.bf16 %v33_v24, %v32_v23  ;;  %vm137_vm4 = vcmp.lt.s32.totalorder %v42_v11, 32  ;;  %v34_v30 = vld [vmem:[%s2375_s3] sm:$0xff]  ;;  %v35_v31 = vld [vmem:[%s2375_s3 + $0x8] sm:$0xff]  ;;  %v36_v32 = vld [vmem:[%s2375_s3 + $0x10] sm:$0xff]  ;;  %vm303_vm9 = vcmask 122880  }
   0x7   :  { %1824 = vmatprep.subr.bf16.mxu0 %v2033_v8  ;;  %1814 = vmatpush3.bf16.msra.mxu1 %v2095_v9  ;;  %v2153_v33 = vpack.c.bf16 %v35_v31, %v34_v30  ;;  %v37_v34 = vld [vmem:[%s2375_s3 + $0x18] sm:$0xff]  ;;  %s2036_s3 = smov 96   ;;  %v2193_v42 = vld [vmem:[%s2376_s4] ss:$0 sm:$0xff]  ;;  %vm307_vm10 = vcmask 123905   ;;  %s2037_s4 = smov [#allocation4]  }
   0x8   :  { %47 = vperm.xlu0 %1965, %v40_v5   ;;  %1815 = vmatprep.subr.bf16.mxu1 %v2033_v8  ;;  %v2159_v35 = vpack.c.bf16 %v37_v34, %v36_v32  ;;  %s1409_s28 = sshll.u32 %s2037_s4, 4  ;;  %s1410_s28 = int_to_ptr.vmem [resolvable:$true] %s1409_s28 }
   0x9   :  { %s1984_s29 = scalar_lea.vmem %s1410_s28, 256  ;;  %p1989_p1 = scmp.lt.s32.totalorder %s1410_s28, %s1410_s28 }
   0xa   :  { %p1985_p0 = scmp.ne.s32.totalorder %s1410_s28, %s1984_s29  ;;  %p1990_p2 = scmp.lt.s32.totalorder %s1984_s29, %s1984_s29 }
   0xb   :  { %1817 = vmatpush3.bf16.msra.mxu1 %v2108_v19 }
   0xc   :  { %1818 = vmatprep.subr.bf16.mxu1 %v2033_v8  ;;  %p1991_p3 = por %p1990_p2, %p1989_p1 }
   0xe   :  { %p1992_p4 = pnand %p1991_p3, %p1985_p0 }
   0xf   :  { %1820 = vmatpush3.bf16.msra.mxu1 %v2117_v22 }
  0x10   :  { %1821 = vmatprep.subr.bf16.mxu1 %v2033_v8 }
  0x13   :  { %1823 = vmatpush3.bf16.msra.mxu1 %v2131_v25 }
  0x14   :  { %1842 = vmatprep.subr.bf16.mxu1 %v2033_v8 }
  0x83   :  { %v45_v12 = vpop.permute.xlu0 %44 }
  0x84   :  { %vm49_vm1 = vcmp.eq.s32.totalorder %v45_v12, %v42_v11 }
  0x85   :  { %v1424_v14 = vsel %vm49_vm1, 1.0, %v2034_v13 }
  0x86   :  { %1565 = vmatprep.mubr.msk.f32.mxu0 %vm55_vm0, %v1424_v14 }
  0x87   :  { %v48_v15 = vpop.permute.xlu0 %47 }
  0x88   :  { %vm50_vm2 = vcmp.eq.s32.totalorder %v48_v15, %v42_v11 }
  0x89   :  { %v1425_v16 = vsel %vm50_vm2, 1.0, %v2034_v13 }
  0x8a   :  { %1566 = vmatmul.mubr.msk.f32.vlgmr.msra.gmra.mrb[0].mxu0 %vm55_vm0, %v1425_v16 }
  0x8b   :  { %1595 = vmatprep.mubr.msk.f32.mxu0 %vm2035_vm3, %v2034_v13  ;;  %1826 = vmatpush3.bf16.msra.mxu0 %v2153_v33 }
  0x8c   :  { %1827 = vmatprep.subr.bf16.mxu0 %v2033_v8 }
  0x8f   :  { %1829 = vmatpush3.bf16.msra.mxu0 %v2159_v35 }
  0x90   :  { %1830 = vmatprep.subr.bf16.mxu0 %v2033_v8 }
 0x15d   :  { %v2136_v26 = vpop.f32.mrb[0].mxu0 }
 0x15e   :  { %v2138_v27 = vpop.f32.mrb[1].mxu0  ;;  %v773_v10 = vrot.slane %v2136_v26, 2  ;;  %v928_v21 = vrot.slane %v2136_v26, 4 }
 0x15f   :  { %1966 = vtanh.f32 %v2138_v27  ;;  %v141_v36 = vrot.slane %v2138_v27, 2  ;;  %v309_v46 = vrot.slane %v2138_v27, 4  ;;  %v464_v55 = vrot.slane %v2138_v27, 6 }
 0x169   :  { %v1967_v28 = vpop.eup %1966 }
 0x16a   :  { %v139_v29 = vsel %vm137_vm4, %v1967_v28, 0.0 }
 0x16b   :  { %1585 = vmatmul.mubr.msk.f32.vlgmr.msra.gmra.mrb[0].mxu1 %vm143_vm5, %v139_v29 }
 0x16c   :  { %1625 = vmatprep.mubr.msk.f32.mxu1 %vm2035_vm3, %v2034_v13  ;;  %1844 = vmatpush3.bf16.msra.mxu1 %v2153_v33 }
 0x16d   :  { %1845 = vmatprep.subr.bf16.mxu1 %v2033_v8 }
 0x170   :  { %1847 = vmatpush3.bf16.msra.mxu1 %v2159_v35 }
 0x171   :  { %1848 = vmatprep.subr.bf16.mxu1 %v2033_v8 }
 0x23e   :  { %v213_v37 = vpop.f32.mrb[0].mxu1 }
 0x23f   :  { %v214_v38 = vadd.f32 %v213_v37, %v141_v36  ;;  %v1586_v39 = vpop.f32.mrb[1].mxu1  ;;  %v1083_v36 = vrot.slane %v2136_v26, 6 }
 0x241   :  { %1968 = vtanh.f32 %v214_v38 }
 0x24b   :  { %v1969_v40 = vpop.eup %1968 }
 0x24c   :  { %225 = vrot.lane.b32.xlu1 %v1969_v40, %s2036_s3 }
 0x2be   :  { %v226_v41 = vpop.permute.xlu1 %225 }
 0x2bf   :  { %302 = vst.msk [vmem:[#allocation4] sm:$0x1] %vm301_vm6, %v226_v41  ;;  %1596 = vmatmul.mubr.msk.f32.vlgmr.msra.gmra.mrb[2].mxu0 %vm227_vm8, %v226_v41 }
 0x2c0   :  { %306 = vst.msk [vmem:[#allocation4 + $0x7] sm:$0x2] %vm305_vm7, %v226_v41  ;;  %1832 = vmatpush3.bf16.msra.mxu0 %v2095_v9  ;;  %1614 = vmatprep.mubr.msk.f32.mxu0 %vm2035_vm3, %v2034_v13 }
 0x2c1   :  { %1833 = vmatprep.subr.bf16.mxu0 %v2033_v8 }
 0x2c4   :  { %1835 = vmatpush3.bf16.msra.mxu0 %v2108_v19 }
 0x2c5   :  { %1836 = vmatprep.subr.bf16.mxu0 %v2033_v8 }
 0x2c8   :  { %1838 = vmatpush3.bf16.msra.mxu0 %v2117_v22 }
 0x2c9   :  { %1839 = vmatprep.subr.bf16.mxu0 %v2033_v8 }
 0x2cc   :  { %1841 = vmatpush3.bf16.msra.mxu0 %v2131_v25 }
 0x2cd   :  { %1860 = vmatprep.subr.bf16.mxu0 %v2033_v8 }
 0x2cf   :  { %1615 = vmatmul.mubr.msk.f32.vlgmr.msra.gmra.mrb[4].mxu0 %vm143_vm5, %v1969_v40 }
 0x2d0   :  { %1862 = vmatpush3.bf16.msra.mxu0 %v2153_v33  ;;  %1655 = vmatprep.mubr.msk.f32.mxu0 %vm2035_vm3, %v2034_v13 }
 0x2d1   :  { %1863 = vmatprep.subr.bf16.mxu0 %v2033_v8 }
 0x2d4   :  { %1865 = vmatpush3.bf16.msra.mxu0 %v2159_v35 }
 0x2d5   :  { %1866 = vmatprep.subr.bf16.mxu0 %v2033_v8 }
 0x392   :  { %v296_v43 = vpop.f32.mrb[2].mxu0 }
 0x393   :  { %v297_v44 = vadd.f32 %v2193_v42, %v296_v43  ;;  %v1597_v45 = vpop.f32.mrb[3].mxu0 }
 0x395   :  { %304 = vst.msk [vmem:[#allocation2] sm:$0x1] %vm303_vm9, %v297_v44 }
 0x396   :  { %308 = vst.msk [vmem:[#allocation2 + $0x7] sm:$0x2] %vm307_vm10, %v297_v44 }
 0x3a2   :  { %v379_v47 = vpop.f32.mrb[4].mxu0 }
 0x3a3   :  { %v380_v48 = vadd.f32 %v379_v47, %v309_v46  ;;  %v1616_v49 = vpop.f32.mrb[5].mxu0 }
 0x3a5   :  { %1970 = vtanh.f32 %v380_v48 }
 0x3af   :  { %v1971_v50 = vpop.eup %1970 }
 0x3b0   :  { %385 = vrot.lane.b32.xlu1 %v1971_v50, %s2036_s3 }
 0x422   :  { %v386_v51 = vpop.permute.xlu1 %385 }
 0x423   :  { %460 = vst.msk [vmem:[#allocation4 + $0x1] sm:$0x1] %vm301_vm6, %v386_v51  ;;  %1626 = vmatmul.mubr.msk.f32.vlgmr.msra.gmra.mrb[2].mxu1 %vm227_vm8, %v386_v51 }
 0x424   :  { %462 = vst.msk [vmem:[#allocation4 + $0x8] sm:$0x2] %vm305_vm7, %v386_v51  ;;  %1850 = vmatpush3.bf16.msra.mxu1 %v2095_v9  ;;  %1644 = vmatprep.mubr.msk.f32.mxu1 %vm2035_vm3, %v2034_v13 }
 0x425   :  { %1851 = vmatprep.subr.bf16.mxu1 %v2033_v8 }
 0x428   :  { %1853 = vmatpush3.bf16.msra.mxu1 %v2108_v19 }
 0x429   :  { %1854 = vmatprep.subr.bf16.mxu1 %v2033_v8 }
 0x42c   :  { %1856 = vmatpush3.bf16.msra.mxu1 %v2117_v22 }
 0x42d   :  { %1857 = vmatprep.subr.bf16.mxu1 %v2033_v8 }
 0x430   :  { %1859 = vmatpush3.bf16.msra.mxu1 %v2131_v25 }
 0x431   :  { %1878 = vmatprep.subr.bf16.mxu1 %v2033_v8 }
 0x433   :  { %1645 = vmatmul.mubr.msk.f32.vlgmr.msra.gmra.mrb[4].mxu1 %vm143_vm5, %v1971_v50 }
 0x434   :  { %1880 = vmatpush3.bf16.msra.mxu1 %v2153_v33  ;;  %1685 = vmatprep.mubr.msk.f32.mxu1 %vm2035_vm3, %v2034_v13 }
 0x435   :  { %1881 = vmatprep.subr.bf16.mxu1 %v2033_v8 }
 0x438   :  { %1883 = vmatpush3.bf16.msra.mxu1 %v2159_v35 }
 0x439   :  { %1884 = vmatprep.subr.bf16.mxu1 %v2033_v8 }
 0x4f6   :  { %v455_v52 = vpop.f32.mrb[2].mxu1 }
 0x4f7   :  { %v456_v53 = vadd.f32 %v2193_v42, %v455_v52  ;;  %v1627_v54 = vpop.f32.mrb[3].mxu1 }
 0x4f9   :  { %461 = vst.msk [vmem:[#allocation2 + $0x1] sm:$0x1] %vm303_vm9, %v456_v53 }
 0x4fa   :  { %463 = vst.msk [vmem:[#allocation2 + $0x8] sm:$0x2] %vm307_vm10, %v456_v53 }
 0x506   :  { %v534_v56 = vpop.f32.mrb[4].mxu1 }
 0x507   :  { %v535_v57 = vadd.f32 %v534_v56, %v464_v55  ;;  %v1646_v58 = vpop.f32.mrb[5].mxu1 }
 0x509   :  { %1972 = vtanh.f32 %v535_v57 }
 0x513   :  { %v1973_v59 = vpop.eup %1972 }
 0x514   :  { %540 = vrot.lane.b32.xlu0 %v1973_v59, %s2036_s3 }
 0x586   :  { %v541_v60 = vpop.permute.xlu0 %540 }
 0x587   :  { %615 = vst.msk [vmem:[#allocation4 + $0x2] sm:$0x1] %vm301_vm6, %v541_v60  ;;  %1656 = vmatmul.mubr.msk.f32.vlgmr.msra.gmra.mrb[6].mxu0 %vm227_vm8, %v541_v60 }
 0x588   :  { %617 = vst.msk [vmem:[#allocation4 + $0x9] sm:$0x2] %vm305_vm7, %v541_v60  ;;  %1868 = vmatpush3.bf16.msra.mxu0 %v2095_v9  ;;  %1674 = vmatprep.mubr.msk.f32.mxu0 %vm2035_vm3, %v2034_v13 }
 0x589   :  { %1869 = vmatprep.subr.bf16.mxu0 %v2033_v8 }
 0x58c   :  { %1871 = vmatpush3.bf16.msra.mxu0 %v2108_v19 }
 0x58d   :  { %1872 = vmatprep.subr.bf16.mxu0 %v2033_v8 }
 0x590   :  { %1874 = vmatpush3.bf16.msra.mxu0 %v2117_v22 }
 0x591   :  { %1875 = vmatprep.subr.bf16.mxu0 %v2033_v8 }
 0x594   :  { %1877 = vmatpush3.bf16.msra.mxu0 %v2131_v25 }
 0x595   :  { %1896 = vmatprep.subr.bf16.mxu0 %v2033_v8 }
 0x597   :  { %1675 = vmatmul.mubr.msk.f32.vlgmr.msra.gmra.mrb[8].mxu0 %vm143_vm5, %v1973_v59 }
 0x598   :  { %1898 = vmatpush3.bf16.msra.mxu0 %v2153_v33  ;;  %1715 = vmatprep.mubr.msk.f32.mxu0 %vm2035_vm3, %v2034_v13 }
 0x599   :  { %1899 = vmatprep.subr.bf16.mxu0 %v2033_v8 }
 0x59c   :  { %1901 = vmatpush3.bf16.msra.mxu0 %v2159_v35 }
 0x59d   :  { %1902 = vmatprep.subr.bf16.mxu0 %v2033_v8 }
 0x65a   :  { %v610_v61 = vpop.f32.mrb[6].mxu0 }
 0x65b   :  { %v611_v62 = vadd.f32 %v2193_v42, %v610_v61  ;;  %v1657_v63 = vpop.f32.mrb[7].mxu0 }
 0x65d   :  { %616 = vst.msk [vmem:[#allocation2 + $0x2] sm:$0x1] %vm303_vm9, %v611_v62 }
 0x65e   :  { %618 = vst.msk [vmem:[#allocation2 + $0x9] sm:$0x2] %vm307_vm10, %v611_v62 }
 0x66a   :  { %v687_v0 = vpop.f32.mrb[8].mxu0 }
 0x66b   :  { %v688_v1 = vadd.f32 %v2136_v26, %v687_v0  ;;  %v1676_v2 = vpop.f32.mrb[9].mxu0 }
 0x66d   :  { %1974 = vtanh.f32 %v688_v1 }
 0x677   :  { %v1975_v3 = vpop.eup %1974 }
 0x678   :  { %693 = vrot.lane.b32.xlu1 %v1975_v3, %s2036_s3 }
 0x6ea   :  { %v694_v4 = vpop.permute.xlu1 %693 }
 0x6eb   :  { %768 = vst.msk [vmem:[#allocation4 + $0x3] sm:$0x1] %vm301_vm6, %v694_v4  ;;  %1686 = vmatmul.mubr.msk.f32.vlgmr.msra.gmra.mrb[6].mxu1 %vm227_vm8, %v694_v4 }
 0x6ec   :  { %770 = vst.msk [vmem:[#allocation4 + $0xa] sm:$0x2] %vm305_vm7, %v694_v4  ;;  %1886 = vmatpush3.bf16.msra.mxu1 %v2095_v9  ;;  %1704 = vmatprep.mubr.msk.f32.mxu1 %vm2035_vm3, %v2034_v13 }
 0x6ed   :  { %1887 = vmatprep.subr.bf16.mxu1 %v2033_v8 }
 0x6f0   :  { %1889 = vmatpush3.bf16.msra.mxu1 %v2108_v19 }
 0x6f1   :  { %1890 = vmatprep.subr.bf16.mxu1 %v2033_v8 }
 0x6f4   :  { %1892 = vmatpush3.bf16.msra.mxu1 %v2117_v22 }
 0x6f5   :  { %1893 = vmatprep.subr.bf16.mxu1 %v2033_v8 }
 0x6f8   :  { %1895 = vmatpush3.bf16.msra.mxu1 %v2131_v25 }
 0x6f9   :  { %1914 = vmatprep.subr.bf16.mxu1 %v2033_v8 }
 0x6fb   :  { %1705 = vmatmul.mubr.msk.f32.vlgmr.msra.gmra.mrb[8].mxu1 %vm143_vm5, %v1975_v3 }
 0x6fc   :  { %1916 = vmatpush3.bf16.msra.mxu1 %v2153_v33  ;;  %1745 = vmatprep.mubr.msk.f32.mxu1 %vm2035_vm3, %v2034_v13 }
 0x6fd   :  { %1917 = vmatprep.subr.bf16.mxu1 %v2033_v8 }
 0x700   :  { %1919 = vmatpush3.bf16.msra.mxu1 %v2159_v35 }
 0x701   :  { %1920 = vmatprep.subr.bf16.mxu1 %v2033_v8 }
 0x7be   :  { %v763_v5 = vpop.f32.mrb[6].mxu1 }
 0x7bf   :  { %v764_v6 = vadd.f32 %v2193_v42, %v763_v5  ;;  %v1687_v7 = vpop.f32.mrb[7].mxu1 }
 0x7c1   :  { %769 = vst.msk [vmem:[#allocation2 + $0x3] sm:$0x1] %vm303_vm9, %v764_v6 }
 0x7c2   :  { %771 = vst.msk [vmem:[#allocation2 + $0xa] sm:$0x2] %vm307_vm10, %v764_v6 }
 0x7ce   :  { %v843_v11 = vpop.f32.mrb[8].mxu1 }
 0x7cf   :  { %v844_v12 = vadd.f32 %v843_v11, %v773_v10  ;;  %v1706_v14 = vpop.f32.mrb[9].mxu1 }
 0x7d1   :  { %1976 = vtanh.f32 %v844_v12 }
 0x7db   :  { %v1977_v15 = vpop.eup %1976 }
 0x7dc   :  { %849 = vrot.lane.b32.xlu0 %v1977_v15, %s2036_s3 }
 0x84e   :  { %v850_v16 = vpop.permute.xlu0 %849 }
 0x84f   :  { %924 = vst.msk [vmem:[#allocation4 + $0x4] sm:$0x1] %vm301_vm6, %v850_v16  ;;  %1716 = vmatmul.mubr.msk.f32.vlgmr.msra.gmra.mrb[10].mxu0 %vm227_vm8, %v850_v16 }
 0x850   :  { %926 = vst.msk [vmem:[#allocation4 + $0xb] sm:$0x2] %vm305_vm7, %v850_v16  ;;  %1904 = vmatpush3.bf16.msra.mxu0 %v2095_v9  ;;  %1734 = vmatprep.mubr.msk.f32.mxu0 %vm2035_vm3, %v2034_v13 }
 0x851   :  { %1905 = vmatprep.subr.bf16.mxu0 %v2033_v8 }
 0x854   :  { %1907 = vmatpush3.bf16.msra.mxu0 %v2108_v19 }
 0x855   :  { %1908 = vmatprep.subr.bf16.mxu0 %v2033_v8 }
 0x858   :  { %1910 = vmatpush3.bf16.msra.mxu0 %v2117_v22 }
 0x859   :  { %1911 = vmatprep.subr.bf16.mxu0 %v2033_v8 }
 0x85c   :  { %1913 = vmatpush3.bf16.msra.mxu0 %v2131_v25 }
 0x85d   :  { %1932 = vmatprep.subr.bf16.mxu0 %v2033_v8 }
 0x85f   :  { %1735 = vmatmul.mubr.msk.f32.vlgmr.msra.gmra.mrb[12].mxu0 %vm143_vm5, %v1977_v15 }
 0x860   :  { %1934 = vmatpush3.bf16.msra.mxu0 %v2153_v33  ;;  %1775 = vmatprep.mubr.msk.f32.mxu0 %vm2035_vm3, %v2034_v13 }
 0x861   :  { %1935 = vmatprep.subr.bf16.mxu0 %v2033_v8 }
 0x864   :  { %1937 = vmatpush3.bf16.msra.mxu0 %v2159_v35 }
 0x865   :  { %1938 = vmatprep.subr.bf16.mxu0 %v2033_v8 }
 0x922   :  { %v919_v17 = vpop.f32.mrb[10].mxu0 }
 0x923   :  { %v920_v18 = vadd.f32 %v2193_v42, %v919_v17  ;;  %v1717_v20 = vpop.f32.mrb[11].mxu0 }
 0x925   :  { %925 = vst.msk [vmem:[#allocation2 + $0x4] sm:$0x1] %vm303_vm9, %v920_v18 }
 0x926   :  { %927 = vst.msk [vmem:[#allocation2 + $0xb] sm:$0x2] %vm307_vm10, %v920_v18 }
 0x932   :  { %v998_v23 = vpop.f32.mrb[12].mxu0 }
 0x933   :  { %v999_v24 = vadd.f32 %v998_v23, %v928_v21  ;;  %v1736_v28 = vpop.f32.mrb[13].mxu0 }
 0x935   :  { %1978 = vtanh.f32 %v999_v24 }
 0x93f   :  { %v1979_v29 = vpop.eup %1978 }
 0x940   :  { %1004 = vrot.lane.b32.xlu1 %v1979_v29, %s2036_s3 }
 0x9b2   :  { %v1005_v30 = vpop.permute.xlu1 %1004 }
 0x9b3   :  { %1079 = vst.msk [vmem:[#allocation4 + $0x5] sm:$0x1] %vm301_vm6, %v1005_v30  ;;  %1746 = vmatmul.mubr.msk.f32.vlgmr.msra.gmra.mrb[10].mxu1 %vm227_vm8, %v1005_v30 }
 0x9b4   :  { %1081 = vst.msk [vmem:[#allocation4 + $0xc] sm:$0x2] %vm305_vm7, %v1005_v30  ;;  %1922 = vmatpush3.bf16.msra.mxu1 %v2095_v9  ;;  %1764 = vmatprep.mubr.msk.f32.mxu1 %vm2035_vm3, %v2034_v13 }
 0x9b5   :  { %1923 = vmatprep.subr.bf16.mxu1 %v2033_v8 }
 0x9b8   :  { %1925 = vmatpush3.bf16.msra.mxu1 %v2108_v19 }
 0x9b9   :  { %1926 = vmatprep.subr.bf16.mxu1 %v2033_v8 }
 0x9bc   :  { %1928 = vmatpush3.bf16.msra.mxu1 %v2117_v22 }
 0x9bd   :  { %1929 = vmatprep.subr.bf16.mxu1 %v2033_v8 }
 0x9c0   :  { %1931 = vmatpush3.bf16.msra.mxu1 %v2131_v25 }
 0x9c1   :  { %1950 = vmatprep.subr.bf16.mxu1 %v2033_v8 }
 0x9c3   :  { %1765 = vmatmul.mubr.msk.f32.vlgmr.msra.gmra.mrb[12].mxu1 %vm143_vm5, %v1979_v29 }
 0x9c4   :  { %1952 = vmatpush3.bf16.msra.mxu1 %v2153_v33  ;;  %1805 = vmatprep.mubr.msk.f32.mxu1 %vm2035_vm3, %v2034_v13 }
 0x9c5   :  { %1953 = vmatprep.subr.bf16.mxu1 %v2033_v8 }
 0x9c8   :  { %1955 = vmatpush3.bf16.msra.mxu1 %v2159_v35 }
 0xa86   :  { %v1074_v31 = vpop.f32.mrb[10].mxu1 }
 0xa87   :  { %v1075_v32 = vadd.f32 %v2193_v42, %v1074_v31  ;;  %v1747_v34 = vpop.f32.mrb[11].mxu1 }
 0xa89   :  { %1080 = vst.msk [vmem:[#allocation2 + $0x5] sm:$0x1] %vm303_vm9, %v1075_v32 }
 0xa8a   :  { %1082 = vst.msk [vmem:[#allocation2 + $0xc] sm:$0x2] %vm307_vm10, %v1075_v32 }
 0xa96   :  { %v1153_v37 = vpop.f32.mrb[12].mxu1 }
 0xa97   :  { %v1154_v38 = vadd.f32 %v1153_v37, %v1083_v36  ;;  %v1766_v33 = vpop.f32.mrb[13].mxu1 }
 0xa99   :  { %1980 = vtanh.f32 %v1154_v38 }
 0xaa3   :  { %v1981_v39 = vpop.eup %1980 }
 0xaa4   :  { %1159 = vrot.lane.b32.xlu0 %v1981_v39, %s2036_s3 }
 0xb16   :  { %v1160_v40 = vpop.permute.xlu0 %1159 }
 0xb17   :  { %1234 = vst.msk [vmem:[#allocation4 + $0x6] sm:$0x1] %vm301_vm6, %v1160_v40  ;;  %1776 = vmatmul.mubr.msk.f32.vlgmr.msra.gmra.mrb[14].mxu0 %vm227_vm8, %v1160_v40 }
 0xb18   :  { %1236 = vst.msk [vmem:[#allocation4 + $0xd] sm:$0x2] %vm305_vm7, %v1160_v40  ;;  %1940 = vmatpush3.bf16.msra.mxu0 %v2095_v9  ;;  %1794 = vmatprep.mubr.msk.f32.mxu0 %vm2035_vm3, %v2034_v13 }
 0xb19   :  { %1941 = vmatprep.subr.bf16.mxu0 %v2033_v8 }
 0xb1c   :  { %1943 = vmatpush3.bf16.msra.mxu0 %v2108_v19 }
 0xb1d   :  { %1944 = vmatprep.subr.bf16.mxu0 %v2033_v8 }
 0xb20   :  { %1946 = vmatpush3.bf16.msra.mxu0 %v2117_v22 }
 0xb21   :  { %1947 = vmatprep.subr.bf16.mxu0 %v2033_v8 }
 0xb24   :  { %1949 = vmatpush3.bf16.msra.mxu0 %v2131_v25 }
 0xb27   :  { %1795 = vmatmul.mubr.msk.f32.vlgmr.msra.gmra.mrb[16].mxu0 %vm143_vm5, %v1981_v39 }
 0xbea   :  { %v1229_v26 = vpop.f32.mrb[14].mxu0 }
 0xbeb   :  { %v1230_v9 = vadd.f32 %v2193_v42, %v1229_v26  ;;  %v1777_v35 = vpop.f32.mrb[15].mxu0 }
 0xbed   :  { %1235 = vst.msk [vmem:[#allocation2 + $0x6] sm:$0x1] %vm303_vm9, %v1230_v9 }
 0xbee   :  { %1237 = vst.msk [vmem:[#allocation2 + $0xd] sm:$0x2] %vm307_vm10, %v1230_v9 }
 0xbfa   :  { %v1306_v13 = vpop.f32.mrb[16].mxu0 }
 0xbfb   :  { %v1310_v19 = vadd.f32 %v1306_v13, %v2138_v27  ;;  %v1796_v41 = vpop.f32.mrb[17].mxu0 }
 0xbfd   :  { %1982 = vtanh.f32 %v1310_v19 }
 0xc07   :  { %v1983_v22 = vpop.eup %1982 }
 0xc08   :  { %1313 = vrot.lane.b32.xlu1 %v1983_v22, %s2036_s3 }
 0xc7a   :  { %v1314_v8 = vpop.permute.xlu1 %1313 }
 0xc7b   :  { %1388 = vst.msk [vmem:[#allocation4 + $0x7] sm:$0x1] %vm301_vm6, %v1314_v8  ;;  %1806 = vmatmul.mubr.msk.f32.vlgmr.msra.gmra.mrb[14].mxu1 %vm227_vm8, %v1314_v8 }
 0xc7c   :  { %1390 = vst.msk [vmem:[#allocation4 + $0xe] sm:$0x2] %vm305_vm7, %v1314_v8 }
 0xc7d   :  { %1995 = shalt.err (!%p1992_p4)
}
 0xc7e   :  { %s1996_s8 = scalar_lea.hbm %s2378_s6, 256 }
 0xc7f   :  { %p1997_p5 = scmp.ne.s32.totalorder %s2378_s6, %s1996_s8  ;;  %p2000_p6 = scmp.lt.u32.totalorder %s1996_s8, %s2378_s6 }
 0xc81   :  { %p2002_p7 = pnand %p2000_p6, %p1997_p5 }
 0xc83   :  { %2005 = shalt.err (!%p2002_p7)
}
 0xc84   :  { %s2038_s11 = smov 128   ;;  %s2039_s12 = smov 8  }
 0xc85   :  { %1415 = dma.vmem_to_hbm [thread:$0]  %s1410_s28, 256, %s2378_s6, [#allocation5], %s2038_s11, %s2038_s11, %s2039_s12  }
 0xc86   :  { %s2040_s15 = smov [#allocation2]  }
 0xc87   :  { %s1397_s16 = sshll.u32 %s2040_s15, 4  ;;  %s1398_s16 = int_to_ptr.vmem [resolvable:$true] %s1397_s16 }
 0xc88   :  { %s2006_s17 = scalar_lea.vmem %s1398_s16, 256  ;;  %p2011_p9 = scmp.lt.s32.totalorder %s1398_s16, %s1398_s16 }
 0xc89   :  { %p2007_p8 = scmp.ne.s32.totalorder %s1398_s16, %s2006_s17  ;;  %p2012_p10 = scmp.lt.s32.totalorder %s2006_s17, %s2006_s17 }
 0xc8b   :  { %p2013_p11 = por %p2012_p10, %p2011_p9 }
 0xc8d   :  { %p2014_p12 = pnand %p2013_p11, %p2007_p8 }
 0xd4e   :  { %v1383_v25 = vpop.f32.mrb[14].mxu1 }
 0xd4f   :  { %v1384_v27 = vadd.f32 %v2193_v42, %v1383_v25  ;;  %v1807_v43 = vpop.f32.mrb[15].mxu1 }
 0xd51   :  { %1389 = vst.msk [vmem:[#allocation2 + $0x7] sm:$0x1] %vm303_vm9, %v1384_v27 }
 0xd52   :  { %1391 = vst.msk [vmem:[#allocation2 + $0xe] sm:$0x2] %vm307_vm10, %v1384_v27 }
 0xd53   :  { %2017 = shalt.err (!%p2014_p12)
}
 0xd54   :  { %s2018_s2 = scalar_lea.hbm %s2377_s5, 256 }
 0xd55   :  { %p2019_p13 = scmp.ne.s32.totalorder %s2377_s5, %s2018_s2  ;;  %p2022_p0 = scmp.lt.u32.totalorder %s2018_s2, %s2377_s5 }
 0xd57   :  { %p2024_p1 = pnand %p2022_p0, %p2019_p13 }
 0xd59   :  { %2027 = shalt.err (!%p2024_p1)
}
 0xd5a   :  { %1403 = dma.vmem_to_hbm [thread:$0]  %s1398_s16, 256, %s2377_s5, [#allocation3], %s2038_s11, %s2038_s11, %s2039_s12  }
 0xd5b   :  { %2028 = dma.done.wait [#allocation3], 256  }
 0xd5c   :  { %2029 = vsyncadd [#allocation3], 4294967040 }
 0xd5d   :  { %2030 = dma.done.wait [#allocation5], 256  }
 0xd5e   :  { %2031 = vsyncadd [#allocation5], 4294967040 }
 0xd5f   :  { %1422 = vsyncpa [#allocation3], 1 }
 0xd60   :  { %1423 = vsyncpa [#allocation5], 1 }

</bundles_post_ra>
